<compile_context>
chip_gen: v5e
topology: v5e:2x2
jax: 0.10.0
libtpu: 0.0.40
codegen_flags: <defaults>
</compile_context>

<pallas_src>
import functools

import jax
import jax.numpy as jnp
from jax.experimental import pallas as pl
from jax.experimental.pallas import tpu as pltpu


def _mlp_kernel(xT_ref, w1_ref, b1_ref, w2_ref, b2_ref, w3_ref, b3_ref, oT_ref):
    xT = xT_ref[...]                              # (2, tm)   batch on lanes
    w1 = w1_ref[...]                              # (H, 2)    PyTorch (out, in)

    # Layer 1: K=2 contraction done as two broadcast FMAs on the VPU
    # (avoids a >98%-padded MXU push); tanh goes to the EUP slot.
    h1 = jnp.tanh(
        w1[:, 0:1] * xT[0:1, :] + w1[:, 1:2] * xT[1:2, :] + b1_ref[...]
    )                                             # (H, tm)

    # Layer 2: (H, H) @ (H, tm) on the MXU, lane-dense result.
    h2 = jnp.tanh(
        jnp.dot(w2_ref[...], h1, preferred_element_type=jnp.float32)
        + b2_ref[...]
    )                                             # (H, tm)

    # Layer 3: (2, H) @ (H, tm) -> lane-dense (2, tm) output slab.
    out = (
        jnp.dot(w3_ref[...], h2, preferred_element_type=jnp.float32)
        + b3_ref[...]
    )
    oT_ref[...] = out.astype(oT_ref.dtype)


def _num_tensorcores_per_chip():
    # v7x has 2 TensorCores per chip; v5e/v6e have 1.
    try:
        kind = jax.devices()[0].device_kind.lower()
        return 2 if "v7" in kind else 1
    except Exception:  # pragma: no cover - conservative fallback
        return 1


def _select_batch_tile(N, tm_cap, n_tc):
    """Largest 128-aligned batch tile; split only for multi-TC chips."""
    n128 = pl.cdiv(N, 128) * 128                  # smallest lane-aligned batch
    tm = max(128, (min(tm_cap, n128) // 128) * 128)
    # On 2-TC chips (v7x) make sure there are >=2 grid steps so both cores get
    # work; on single-TC v5e/v6e keep one big tile (no extra per-step overhead).
    if n_tc >= 2 and n128 >= 2 * 128 and pl.cdiv(N, tm) == 1:
        tm = pl.cdiv(pl.cdiv(N, 2), 128) * 128
    return tm


def mlp_forward_transposed(xT, params, *, tm=8192):
    """3-layer MLP on pre-transposed input: xT (2, N) -> output (2, N)."""
    w1, b1, w2, b2, w3, b3 = params
    in_dim, N = xT.shape
    H = w1.shape[0]
    out_dim = w3.shape[0]

    tm = _select_batch_tile(N, tm, _num_tensorcores_per_chip())
    grid = (pl.cdiv(N, tm),)   # ragged last block handled by Pallas, no pad

    b1c = b1.reshape(H, 1)
    b2c = b2.reshape(H, 1)
    b3c = b3.reshape(out_dim, 1)

    outT = pl.pallas_call(
        _mlp_kernel,
        out_shape=jax.ShapeDtypeStruct((out_dim, N), xT.dtype),
        grid_spec=pl.GridSpec(
            grid=grid,
            in_specs=[
                pl.BlockSpec((in_dim, tm), lambda i: (0, i)),    # x^T tile
                pl.BlockSpec((H, in_dim), lambda i: (0, 0)),     # w1 (resident)
                pl.BlockSpec((H, 1), lambda i: (0, 0)),          # b1
                pl.BlockSpec((H, H), lambda i: (0, 0)),          # w2 (resident)
                pl.BlockSpec((H, 1), lambda i: (0, 0)),          # b2
                pl.BlockSpec((out_dim, H), lambda i: (0, 0)),    # w3 (resident)
                pl.BlockSpec((out_dim, 1), lambda i: (0, 0)),    # b3
            ],
            out_specs=pl.BlockSpec((out_dim, tm), lambda i: (0, i)),
        ),
        compiler_params=pltpu.CompilerParams(
            dimension_semantics=("parallel",),
        ),
    )(xT, w1, b1c, w2, b2c, w3, b3c)
    return outT


@functools.partial(jax.jit, static_argnames=("tm",))
def mlp_forward(x, params, *, tm=8192):
    """Standard-layout entry point: x (N, 2) -> (N, 2).

    jit-wrapped so the (N,2)<->(2,N) layout transposes fuse with the dispatch
    instead of running as standalone XLA passes.
    """
    return mlp_forward_transposed(x.T, params, tm=tm).T


def init_params(key, hidden_dim, in_dim=2, out_dim=2, dtype=jnp.float32):
    """Deterministic parameter init, PyTorch layout: w (out, in), b (out,)."""
    k1, k2, k3, k4, k5, k6 = jax.random.split(key, 6)
    w1 = jax.random.normal(k1, (hidden_dim, in_dim), dtype) * 0.5
    b1 = jax.random.normal(k2, (hidden_dim,), dtype) * 0.1
    w2 = jax.random.normal(k3, (hidden_dim, hidden_dim), dtype) * 0.2
    b2 = jax.random.normal(k4, (hidden_dim,), dtype) * 0.1
    w3 = jax.random.normal(k5, (out_dim, hidden_dim), dtype) * 0.5
    b3 = jax.random.normal(k6, (out_dim,), dtype) * 0.1
    return (w1, b1, w2, b2, w3, b3)


def mlp_reference(x, params):
    """Pure-JAX reference matching the PyTorch module exactly (y = x @ W.T + b)."""
    w1, b1, w2, b2, w3, b3 = params
    h1 = jnp.tanh(x @ w1.T + b1)
    h2 = jnp.tanh(h1 @ w2.T + b2)
    return h2 @ w3.T + b3


if __name__ == "__main__":
    hidden_dim = 32
    batch = 16          # arbitrary: kernel handles the ragged 128-lane tail

    key = jax.random.PRNGKey(0)
    kx, kp = jax.random.split(key)
    x = jax.random.normal(kx, (batch, 2), jnp.float32)
    params = init_params(kp, hidden_dim)

    out = mlp_forward(x, params)
    out = jax.block_until_ready(out)

    ref = mlp_reference(x, params)
    assert out.shape == (batch, 2)
    assert jnp.allclose(out, ref, atol=1e-4, rtol=1e-4)

    print("KERNEL_OK")
</pallas_src>

<mosaic_0001>
module attributes {stable_mosaic.version = 11 : i64} {
  func.func @_mlp_kernel(%arg0: i32, %arg1: memref<2x128xf32, #tpu.memory_space<vmem>>, %arg2: memref<32x2xf32, #tpu.memory_space<vmem>>, %arg3: memref<32x1xf32, #tpu.memory_space<vmem>>, %arg4: memref<32x32xf32, #tpu.memory_space<vmem>>, %arg5: memref<32x1xf32, #tpu.memory_space<vmem>>, %arg6: memref<2x32xf32, #tpu.memory_space<vmem>>, %arg7: memref<2x1xf32, #tpu.memory_space<vmem>>, %arg8: memref<2x128xf32, #tpu.memory_space<vmem>>) attributes {dimension_semantics = [#tpu.dimension_semantics<parallel>], iteration_bounds = array<i64: 1>, scalar_prefetch = 0 : i64, scratch_operands = 0 : i64, tpu.core_type = #tpu.core_type<tc>, window_params = [{transform_indices = @transform_0, window_bounds = array<i64: 2, 128>}, {pipeline_mode = #tpu.pipeline_mode<synchronous>, transform_indices = @transform_1, window_bounds = array<i64: 32, 2>}, {pipeline_mode = #tpu.pipeline_mode<synchronous>, transform_indices = @transform_2, window_bounds = array<i64: 32, 1>}, {pipeline_mode = #tpu.pipeline_mode<synchronous>, transform_indices = @transform_3, window_bounds = array<i64: 32, 32>}, {pipeline_mode = #tpu.pipeline_mode<synchronous>, transform_indices = @transform_4, window_bounds = array<i64: 32, 1>}, {pipeline_mode = #tpu.pipeline_mode<synchronous>, transform_indices = @transform_5, window_bounds = array<i64: 2, 32>}, {pipeline_mode = #tpu.pipeline_mode<synchronous>, transform_indices = @transform_6, window_bounds = array<i64: 2, 1>}, {transform_indices = @transform_7, window_bounds = array<i64: 2, 128>}]} {
    %c0 = arith.constant 0 : index
    %c0_0 = arith.constant 0 : index
    %0 = vector.load %arg1[%c0, %c0_0] : memref<2x128xf32, #tpu.memory_space<vmem>>, vector<2x128xf32>
    %c0_1 = arith.constant 0 : index
    %c0_2 = arith.constant 0 : index
    %1 = vector.load %arg2[%c0_1, %c0_2] : memref<32x2xf32, #tpu.memory_space<vmem>>, vector<32x2xf32>
    %2 = vector.extract_strided_slice %1 {offsets = [0, 0], sizes = [32, 1], strides = [1, 1]} : vector<32x2xf32> to vector<32x1xf32>
    %3 = vector.extract_strided_slice %0 {offsets = [0, 0], sizes = [1, 128], strides = [1, 1]} : vector<2x128xf32> to vector<1x128xf32>
    %4 = vector.broadcast %2 : vector<32x1xf32> to vector<32x128xf32>
    %5 = vector.broadcast %3 : vector<1x128xf32> to vector<32x128xf32>
    %6 = arith.mulf %4, %5 : vector<32x128xf32>
    %7 = vector.extract_strided_slice %1 {offsets = [0, 1], sizes = [32, 1], strides = [1, 1]} : vector<32x2xf32> to vector<32x1xf32>
    %8 = vector.extract_strided_slice %0 {offsets = [1, 0], sizes = [1, 128], strides = [1, 1]} : vector<2x128xf32> to vector<1x128xf32>
    %9 = vector.broadcast %7 : vector<32x1xf32> to vector<32x128xf32>
    %10 = vector.broadcast %8 : vector<1x128xf32> to vector<32x128xf32>
    %11 = arith.mulf %9, %10 : vector<32x128xf32>
    %12 = arith.addf %6, %11 : vector<32x128xf32>
    %c0_3 = arith.constant 0 : index
    %c0_4 = arith.constant 0 : index
    %13 = vector.load %arg3[%c0_3, %c0_4] : memref<32x1xf32, #tpu.memory_space<vmem>>, vector<32x1xf32>
    %14 = vector.broadcast %13 : vector<32x1xf32> to vector<32x128xf32>
    %15 = arith.addf %12, %14 : vector<32x128xf32>
    %16 = math.tanh %15 : vector<32x128xf32>
    %c0_5 = arith.constant 0 : index
    %c0_6 = arith.constant 0 : index
    %17 = vector.load %arg4[%c0_5, %c0_6] : memref<32x32xf32, #tpu.memory_space<vmem>>, vector<32x32xf32>
    %cst = arith.constant dense<0.000000e+00> : vector<32x128xf32>
    %18 = tpu.matmul %17, %16, %cst {dimension_numbers = #tpu.dot_dimension_numbers<[1], [0], [0], [1], [0, 0, 1, 1], [], []>} : vector<32x32xf32>, vector<32x128xf32>, vector<32x128xf32> -> vector<32x128xf32>
    %c0_7 = arith.constant 0 : index
    %c0_8 = arith.constant 0 : index
    %19 = vector.load %arg5[%c0_7, %c0_8] : memref<32x1xf32, #tpu.memory_space<vmem>>, vector<32x1xf32>
    %20 = vector.broadcast %19 : vector<32x1xf32> to vector<32x128xf32>
    %21 = arith.addf %18, %20 : vector<32x128xf32>
    %22 = math.tanh %21 : vector<32x128xf32>
    %c0_9 = arith.constant 0 : index
    %c0_10 = arith.constant 0 : index
    %23 = vector.load %arg6[%c0_9, %c0_10] : memref<2x32xf32, #tpu.memory_space<vmem>>, vector<2x32xf32>
    %cst_11 = arith.constant dense<0.000000e+00> : vector<2x128xf32>
    %24 = tpu.matmul %23, %22, %cst_11 {dimension_numbers = #tpu.dot_dimension_numbers<[1], [0], [0], [1], [0, 0, 1, 1], [], []>} : vector<2x32xf32>, vector<32x128xf32>, vector<2x128xf32> -> vector<2x128xf32>
    %c0_12 = arith.constant 0 : index
    %c0_13 = arith.constant 0 : index
    %25 = vector.load %arg7[%c0_12, %c0_13] : memref<2x1xf32, #tpu.memory_space<vmem>>, vector<2x1xf32>
    %26 = vector.broadcast %25 : vector<2x1xf32> to vector<2x128xf32>
    %27 = arith.addf %24, %26 : vector<2x128xf32>
    %c0_14 = arith.constant 0 : index
    %c0_15 = arith.constant 0 : index
    %28 = vector.load %arg8[%c0_14, %c0_15] : memref<2x128xf32, #tpu.memory_space<vmem>>, vector<2x128xf32>
    tpu.vector_store %arg8[%c0_14, %c0_15], %27 {strides = array<i32>} : memref<2x128xf32, #tpu.memory_space<vmem>>, vector<2x128xf32>,
    return
  }
  func.func @transform_0(%arg0: i32) -> (i32, i32) {
    %c0_i32 = arith.constant 0 : i32
    %c0_i32_0 = arith.constant 0 : i32
    return %c0_i32, %arg0 : i32, i32
  }
  func.func @transform_1(%arg0: i32) -> (i32, i32) {
    %c0_i32 = arith.constant 0 : i32
    %c0_i32_0 = arith.constant 0 : i32
    %c0_i32_1 = arith.constant 0 : i32
    return %c0_i32, %c0_i32_0 : i32, i32
  }
  func.func @transform_2(%arg0: i32) -> (i32, i32) {
    %c0_i32 = arith.constant 0 : i32
    %c0_i32_0 = arith.constant 0 : i32
    %c0_i32_1 = arith.constant 0 : i32
    return %c0_i32, %c0_i32_0 : i32, i32
  }
  func.func @transform_3(%arg0: i32) -> (i32, i32) {
    %c0_i32 = arith.constant 0 : i32
    %c0_i32_0 = arith.constant 0 : i32
    %c0_i32_1 = arith.constant 0 : i32
    return %c0_i32, %c0_i32_0 : i32, i32
  }
  func.func @transform_4(%arg0: i32) -> (i32, i32) {
    %c0_i32 = arith.constant 0 : i32
    %c0_i32_0 = arith.constant 0 : i32
    %c0_i32_1 = arith.constant 0 : i32
    return %c0_i32, %c0_i32_0 : i32, i32
  }
  func.func @transform_5(%arg0: i32) -> (i32, i32) {
    %c0_i32 = arith.constant 0 : i32
    %c0_i32_0 = arith.constant 0 : i32
    %c0_i32_1 = arith.constant 0 : i32
    return %c0_i32, %c0_i32_0 : i32, i32
  }
  func.func @transform_6(%arg0: i32) -> (i32, i32) {
    %c0_i32 = arith.constant 0 : i32
    %c0_i32_0 = arith.constant 0 : i32
    %c0_i32_1 = arith.constant 0 : i32
    return %c0_i32, %c0_i32_0 : i32, i32
  }
  func.func @transform_7(%arg0: i32) -> (i32, i32) {
    %c0_i32 = arith.constant 0 : i32
    %c0_i32_0 = arith.constant 0 : i32
    return %c0_i32, %arg0 : i32, i32
  }
}

</mosaic_0001>

<bundles_post_ra>
// kernel: mlp_forward.1
= control target key start
LH: loop header
LB: loop body
LE: loop exit
PB: predicated region body
PF: predicated region fallthrough
CT: control target
= control target key end

     0   :  { %v302_v2 = vmov 0   ;;  %s410_s0 = inlined_call_operand.vmem [shape: f32[2,16], index: 0, kind: input, shape index: {}]   ;;  %s411_s1 = inlined_call_operand.vmem [shape: f32[32,2], index: 1, kind: input, shape index: {}]   ;;  %s412_s2 = inlined_call_operand.vmem [shape: f32[32,1], index: 2, kind: input, shape index: {}]   ;;  %s413_s3 = inlined_call_operand.vmem [shape: f32[32,32], index: 3, kind: input, shape index: {}]   ;;  %s414_s4 = inlined_call_operand.vmem [shape: f32[32,1], index: 4, kind: input, shape index: {}]   ;;  %s415_s5 = inlined_call_operand.vmem [shape: f32[2,32], index: 5, kind: input, shape index: {}]   ;;  %s416_s6 = inlined_call_operand.vmem [shape: f32[2,1], index: 6, kind: input, shape index: {}]   ;;  %s417_s7 = inlined_call_operand.hbm [shape: f32[2,16], index: 7, kind: output, shape index: {}]  }
   0x1   :  { %v31_v0 = vld [vmem:[%s411_s1 + $0x18] sm:$0xff]  ;;  %v30_v1 = vld [vmem:[%s411_s1 + $0x10] sm:$0xff]  ;;  %253 = vset.pattern.permute.xlu1 %v302_v2  ;;  %251 = vset.pattern.permute.xlu0 %v302_v2  ;;  %v29_v3 = vld [vmem:[%s411_s1 + $0x8] sm:$0xff] }
   0x2   :  { %49 = vperm.xlu0 %251, %v31_v0   ;;  %44 = vperm.xlu1 %253, %v30_v1  }
   0x3   :  { %255 = vset.pattern.permute.xlu2 %v302_v2 }
   0x4   :  { %12 = vsyncpa [#allocation3], 0  ;;  %39 = vperm.xlu2 %255, %v29_v3   ;;  %v303_v4 = vmov 1   ;;  %v28_v5 = vld [vmem:[%s411_s1] sm:$0xff]  ;;  %v85_v6 = vld [vmem:[%s412_s2 + $0x18] sm:$0xff]  ;;  %vm142_vm0 = vcmask 261120  }
   0x5   :  { %v84_v7 = vld [vmem:[%s412_s2 + $0x10] sm:$0xff]  ;;  %v82_v8 = vld [vmem:[%s412_s2] sm:$0xff]  ;;  %v83_v9 = vld [vmem:[%s412_s2 + $0x8] sm:$0xff]  ;;  %s304_s10 = smov [#allocation2]   ;;  %s226_s14 = sshll.u32 %s417_s7, 4  ;;  %s227_s14 = int_to_ptr.hbm [resolvable:$true] %s226_s14 }
   0x6   :  { %v121_v10 = vld [vmem:[%s414_s4 + $0x18] sm:$0xff]  ;;  %v189_v11 = vld [vmem:[%s416_s6] sm:$0x3]  ;;  %v120_v12 = vld [vmem:[%s414_s4 + $0x10] sm:$0xff]  ;;  %s224_s11 = sshll.u32 %s304_s10, 4  ;;  %s225_s11 = int_to_ptr.vmem [resolvable:$true] %s224_s11 }
   0x7   :  { %v119_v13 = vld [vmem:[%s414_s4 + $0x8] sm:$0xff]  ;;  %v118_v14 = vld [vmem:[%s414_s4] sm:$0xff]  ;;  %v116_v52 = vld [vmem:[%s413_s3 + $0x10] sm:$0xff] }
   0x8   :  { %v27_v21 = vld [vmem:[%s410_s0] sm:$0x3]  ;;  %v115_v51 = vld [vmem:[%s413_s3 + $0x8] sm:$0xff]  ;;  %v117_v53 = vld [vmem:[%s413_s3 + $0x18] sm:$0xff] }
   0x9   :  { %v73_v22 = vperm.slane %v27_v21, 1  ;;  %v52_v23 = vperm.slane %v27_v21, 0  ;;  %v114_v49 = vld [vmem:[%s413_s3] sm:$0xff] }
   0xa   :  { %252 = vset.pattern.permute.xlu0 %v303_v4  ;;  %254 = vset.pattern.permute.xlu1 %v303_v4 }
   0xb   :  { %70 = vperm.xlu0 %252, %v31_v0   ;;  %66 = vperm.xlu1 %254, %v30_v1  }
   0xc   :  { %256 = vset.pattern.permute.xlu2 %v303_v4 }
   0xd   :  { %62 = vperm.xlu2 %256, %v29_v3  }
  0x13   :  { %257 = vset.pattern.permute.xlu1 %v302_v2  ;;  %58 = vperm.xlu0 %252, %v28_v5  }
  0x14   :  { %103 = vperm.xlu1 %257, %v85_v6  }
  0x15   :  { %258 = vset.pattern.permute.xlu2 %v302_v2 }
  0x16   :  { %34 = vperm.xlu2 %258, %v28_v5   ;;  %v188_v5 = vld [vmem:[%s415_s5] sm:$0x3] }
  0x1b   :  { %259 = vset.pattern.permute.xlu0 %v302_v2 }
  0x1c   :  { %98 = vperm.xlu1 %257, %v84_v7   ;;  %88 = vperm.xlu0 %259, %v82_v8  }
  0x1e   :  { %93 = vperm.xlu2 %258, %v83_v9  }
  0x24   :  { %139 = vperm.xlu1 %257, %v121_v10   ;;  %192 = vperm.xlu0 %259, %v189_v11  }
  0x26   :  { %134 = vperm.xlu2 %258, %v120_v12  }
  0x2c   :  { %129 = vperm.xlu1 %257, %v119_v13  }
  0x2e   :  { %124 = vperm.xlu2 %258, %v118_v14  }
  0x5e   :  { %v40_v15 = vpop.permute.xlu2 %39 }
  0x5f   :  { %v54_v30 = vmul.f32 %v52_v23, %v40_v15 }
  0x67   :  { %v63_v18 = vpop.permute.xlu2 %62 }
  0x68   :  { %v75_v31 = vmul.f32 %v73_v22, %v63_v18 }
  0x6a   :  { %v79_v36 = vadd.f32 %v75_v31, %v54_v30 }
  0x70   :  { %v35_v25 = vpop.permute.xlu2 %34 }
  0x71   :  { %v53_v34 = vmul.f32 %v52_v23, %v35_v25 }
  0x74   :  { %v45_v16 = vpop.permute.xlu1 %44  ;;  %v50_v17 = vpop.permute.xlu0 %49 }
  0x75   :  { %v56_v26 = vmul.f32 %v52_v23, %v50_v17  ;;  %v55_v35 = vmul.f32 %v52_v23, %v45_v16 }
  0x78   :  { %v94_v38 = vpop.permute.xlu2 %93 }
  0x79   :  { %v107_v43 = vadd.f32 %v94_v38, %v79_v36 }
  0x7d   :  { %v71_v19 = vpop.permute.xlu0 %70  ;;  %v67_v20 = vpop.permute.xlu1 %66 }
  0x7e   :  { %v77_v24 = vmul.f32 %v73_v22, %v71_v19  ;;  %v76_v33 = vmul.f32 %v73_v22, %v67_v20 }
  0x80   :  { %v81_v28 = vadd.f32 %v77_v24, %v56_v26  ;;  %v80_v39 = vadd.f32 %v76_v33, %v55_v35  ;;  %v135_v56 = vpop.permute.xlu2 %134 }
  0x85   :  { %v59_v27 = vpop.permute.xlu0 %58 }
  0x86   :  { %v104_v29 = vpop.permute.xlu1 %103  ;;  %v74_v37 = vmul.f32 %v73_v22, %v59_v27 }
  0x87   :  { %v109_v32 = vadd.f32 %v104_v29, %v81_v28 }
  0x88   :  { %v78_v45 = vadd.f32 %v74_v37, %v53_v34  ;;  %v125_v0 = vpop.permute.xlu2 %124 }
  0x89   :  { %260 = vtanh.f32 %v109_v32 }
  0x8e   :  { %v99_v40 = vpop.permute.xlu1 %98  ;;  %v89_v41 = vpop.permute.xlu0 %88 }
  0x8f   :  { %v261_v42 = vpop.eup %260  ;;  %v108_v44 = vadd.f32 %v99_v40, %v80_v39  ;;  %v106_v46 = vadd.f32 %v89_v41, %v78_v45 }
  0x90   :  { %167 = vmatpush.msra.mxu0 %v261_v42  ;;  %240 = vmatpush.msra.mxu2 %v261_v42 }
  0x91   :  { %262 = vtanh.f32 %v108_v44  ;;  %241 = vmatpush.msra.mxu3 %v261_v42 }
  0x92   :  { %264 = vtanh.f32 %v107_v43 }
  0x93   :  { %266 = vtanh.f32 %v106_v46 }
  0x96   :  { %v140_v54 = vpop.permute.xlu1 %139  ;;  %v193_v7 = vpop.permute.xlu0 %192 }
  0x97   :  { %v263_v47 = vpop.eup %262 }
  0x98   :  { %168 = vmatpush.msra.mxu0 %v263_v47  ;;  %242 = vmatpush.msra.mxu2 %v263_v47  ;;  %v265_v48 = vpop.eup %264 }
  0x99   :  { %243 = vmatpush.msra.mxu3 %v263_v47  ;;  %v267_v50 = vpop.eup %266 }
  0x9a   :  { %169 = vmatpush.msra.mxu0 %v265_v48  ;;  %244 = vmatpush.msra.mxu2 %v265_v48 }
  0x9b   :  { %245 = vmatpush.msra.mxu3 %v265_v48 }
  0x9c   :  { %170 = vmatpush.msra.mxu0 %v267_v50  ;;  %246 = vmatpush.msra.mxu2 %v267_v50 }
  0x9d   :  { %247 = vmatpush.msra.mxu3 %v267_v50  ;;  %235 = vmatmul.msk.f32.vlgmr.msra.gmra.mxu0 %vm142_vm0, %v114_v49 }
  0x9e   :  { %236 = vmatmul.msk.f32.vlgmr.msra.gmra.mxu2 %vm142_vm0, %v115_v51  ;;  %237 = vmatmul.msk.f32.vlgmr.msra.gmra.mxu3 %vm142_vm0, %v116_v52  ;;  %v130_v61 = vpop.permute.xlu1 %129 }
  0xa6   :  { %238 = vmatmul.msk.f32.gmra.mxu3 %vm142_vm0, %v117_v53 }
 0x11a   :  { %v172_v62 = vpop.f32.mrf.mxu0 }
 0x11b   :  { %v173_v1 = vadd.f32 %v172_v62, %v125_v0 }
 0x121   :  { %v178_v55 = vpop.f32.mrf.mxu3  ;;  %v175_v57 = vpop.f32.mrf.mxu2 }
 0x122   :  { %v179_v59 = vadd.f32 %v178_v55, %v135_v56  ;;  %v176_v63 = vadd.f32 %v175_v57, %v130_v61 }
 0x129   :  { %v181_v58 = vpop.f32.mrf.mxu3 }
 0x12a   :  { %v182_v60 = vadd.f32 %v181_v58, %v140_v54 }
 0x12c   :  { %268 = vtanh.f32 %v182_v60 }
 0x12d   :  { %270 = vtanh.f32 %v179_v59 }
 0x12e   :  { %272 = vtanh.f32 %v176_v63 }
 0x12f   :  { %274 = vtanh.f32 %v173_v1 }
 0x132   :  { %v269_v2 = vpop.eup %268 }
 0x133   :  { %210 = vmatpush.msra.mxu1 %v269_v2  ;;  %v271_v3 = vpop.eup %270 }
 0x134   :  { %v273_v4 = vpop.eup %272 }
 0x135   :  { %211 = vmatpush.msra.mxu1 %v271_v3  ;;  %v275_v6 = vpop.eup %274 }
 0x137   :  { %212 = vmatpush.msra.mxu1 %v273_v4 }
 0x139   :  { %213 = vmatpush.msra.mxu1 %v275_v6 }
 0x13a   :  { %239 = vmatmul.msk.f32.vlgmr.msra.gmra.mxu1 %vm142_vm0, %v188_v5 }
 0x1b7   :  { %v215_v8 = vpop.f32.mrf.mxu1 }
 0x1b8   :  { %v216_v9 = vadd.f32 %v215_v8, %v193_v7 }
 0x1ba   :  { %218 = vst [vmem:[#allocation2] sm:$0x3] %v216_v9 }
 0x1bb   :  { %229 = dma.vmem_to_hbm [thread:$0]  %s225_s11, 32, %s227_s14, [#allocation3]  }
 0x1bc   :  { %300 = dma.done.wait [#allocation3], 32  }
 0x1bd   :  { %301 = vsyncadd [#allocation3], 4294967264 }
 0x1be   :  { %234 = vsyncpa [#allocation3], 1 }

</bundles_post_ra>
